<compile_context>
chip_gen: v7x
topology: tpu7x:2x2x1
jax: 0.10.0
libtpu: 0.0.40
codegen_flags: <defaults>
</compile_context>

<pallas_src>
import functools

import jax
import jax.numpy as jnp
from jax.experimental import pallas as pl
from jax.experimental.pallas import tpu as pltpu

LANES = 128
SUBLANES = 8
ROW_ALIGN = 16        # bf16-safe sublane-pack granularity
TILE_ROWS_MAX = 2048  # 2048*128*4 B = 1 MiB per f32 input block
NCORES = 2            # v7x has 2 TensorCores; harmless (serial) on v5e/v6e


def _bce_kernel(n_valid, needs_mask, x_ref, y_ref, acc_ref):
    c = pl.program_id(0)   # core axis ("parallel")
    t = pl.program_id(1)   # tile axis ("arbitrary", accumulator resident)

    @pl.when(t == 0)
    def _():
        acc_ref[...] = jnp.zeros_like(acc_ref)

    x = x_ref[...].astype(jnp.float32)
    y = y_ref[...].astype(jnp.float32)

    # Numerically-stable BCE with logits (same form PyTorch uses):
    #   max(x, 0) - x * y + log(1 + exp(-|x|))
    loss = jnp.maximum(x, 0.0) - x * y + jnp.log1p(jnp.exp(-jnp.abs(x)))

    if needs_mask:
        # Mask out padded / over-covered elements via their global index.
        tile_rows = x_ref.shape[0]
        logical_tile = c * pl.num_programs(1) + t
        row0 = logical_tile * tile_rows
        row_ids = jax.lax.broadcasted_iota(jnp.int32, loss.shape, 0) + row0
        lane_ids = jax.lax.broadcasted_iota(jnp.int32, loss.shape, 1)
        gidx = row_ids * LANES + lane_ids
        loss = jnp.where(gidx < n_valid, loss, 0.0)

    # Lane-shaped partial sum: pure VPU adds (no cross-lane reduce per tile).
    acc_ref[...] += jnp.sum(
        loss.reshape(loss.shape[0] // SUBLANES, SUBLANES, LANES), axis=0)


def binary_loss(model_output, targets):
    """BCEWithLogitsLoss (mean) over matching arbitrary-shaped inputs."""
    assert model_output.shape == targets.shape
    n = int(model_output.size)

    x = model_output.reshape(-1)
    y = targets.reshape(-1)

    # Pad only up to the row-alignment granularity (<= ROW_ALIGN*LANES elems).
    # Typical NCHW sizes are already aligned -> zero-copy path.  Padded
    # elements are masked inside the kernel, so the pad value is irrelevant.
    pad = (-n) % (ROW_ALIGN * LANES)
    if pad:
        x = jnp.pad(x, (0, pad))
        y = jnp.pad(y, (0, pad))

    rows = x.shape[0] // LANES
    x2 = x.reshape(rows, LANES)
    y2 = y.reshape(rows, LANES)

    tile_rows = min(TILE_ROWS_MAX, rows)          # multiple of 16 by construction
    tiles_total = pl.cdiv(rows, tile_rows)
    tiles_per_core = pl.cdiv(tiles_total, NCORES)

    covered = NCORES * tiles_per_core * tile_rows * LANES
    needs_mask = covered != n

    def in_index_map(c, t):
        logical = c * tiles_per_core + t
        # Clamp so an out-of-range logical tile still issues an in-bounds DMA;
        # the in-kernel mask zeroes its contribution.
        return (jnp.minimum(logical, tiles_total - 1), 0)

    in_spec = pl.BlockSpec((tile_rows, LANES), in_index_map)

    partial_sums = pl.pallas_call(
        functools.partial(_bce_kernel, n, needs_mask),
        out_shape=jax.ShapeDtypeStruct((NCORES, SUBLANES, LANES), jnp.float32),
        grid_spec=pltpu.PrefetchScalarGridSpec(
            num_scalar_prefetch=0,
            grid=(NCORES, tiles_per_core),
            in_specs=[in_spec, in_spec],
            out_specs=pl.BlockSpec((None, SUBLANES, LANES),
                                   lambda c, t: (c, 0, 0)),
        ),
        compiler_params=pltpu.CompilerParams(
            dimension_semantics=("parallel", "arbitrary"),
            vmem_limit_bytes=32 * 1024 * 1024,
        ),
    )(x2, y2)

    # Single tiny final reduction + mean in plain JAX.
    return jnp.sum(partial_sums) / jnp.float32(n)


def _reference_bce(x, y):
    x = x.astype(jnp.float32)
    y = y.astype(jnp.float32)
    loss = jnp.maximum(x, 0.0) - x * y + jnp.log1p(jnp.exp(-jnp.abs(x)))
    return jnp.mean(loss)


if __name__ == "__main__":
    key = jax.random.PRNGKey(0)
    k1, k2, k3, k4 = jax.random.split(key, 4)

    # NCHW logits + binary targets (lane-aligned count: 2*4*16*16 = 2048).
    logits = jax.random.normal(k1, (2, 4, 16, 16), dtype=jnp.float32)
    tgts = (jax.random.uniform(k2, (2, 4, 16, 16)) > 0.5).astype(jnp.float32)
    loss = jax.block_until_ready(binary_loss(logits, tgts))
    ref = _reference_bce(logits, tgts)
    assert jnp.allclose(loss, ref, rtol=1e-5, atol=1e-5), (loss, ref)

    # Unaligned element count exercises the in-kernel tail mask.
    logits2 = jax.random.normal(k3, (2, 3, 7, 5), dtype=jnp.float32)
    tgts2 = (jax.random.uniform(k4, (2, 3, 7, 5)) > 0.5).astype(jnp.float32)
    loss2 = jax.block_until_ready(binary_loss(logits2, tgts2))
    ref2 = _reference_bce(logits2, tgts2)
    assert jnp.allclose(loss2, ref2, rtol=1e-5, atol=1e-5), (loss2, ref2)

    # bf16 inputs take the native-dtype path (widened in-kernel).
    logits3 = logits.astype(jnp.bfloat16)
    tgts3 = tgts.astype(jnp.bfloat16)
    loss3 = jax.block_until_ready(binary_loss(logits3, tgts3))
    ref3 = _reference_bce(logits3, tgts3)
    assert jnp.allclose(loss3, ref3, rtol=1e-4, atol=1e-4), (loss3, ref3)

    print("KERNEL_OK")
</pallas_src>

<mosaic_0001>
module attributes {stable_mosaic.version = 11 : i64} {
  func.func @_bce_kernel(%arg0: i32, %arg1: i32, %arg2: memref<16x128xf32, #tpu.memory_space<vmem>>, %arg3: memref<16x128xf32, #tpu.memory_space<vmem>>, %arg4: memref<1x8x128xf32, #tpu.memory_space<vmem>>) attributes {dimension_semantics = [#tpu.dimension_semantics<parallel>, #tpu.dimension_semantics<arbitrary>], iteration_bounds = array<i64: 2, 1>, scalar_prefetch = 0 : i64, scratch_operands = 0 : i64, tpu.core_type = #tpu.core_type<tc>, window_params = [{transform_indices = @transform_0, window_bounds = array<i64: 16, 128>}, {transform_indices = @transform_1, window_bounds = array<i64: 16, 128>}, {transform_indices = @transform_2, window_bounds = array<i64: 1, 8, 128>}]} {
    %c0_i32 = arith.constant 0 : i32
    %0 = arith.cmpi eq, %arg1, %c0_i32 : i32
    %1 = arith.extui %0 : i1 to i32
    %c0_i32_0 = arith.constant 0 : i32
    %2 = arith.cmpi ne, %1, %c0_i32_0 : i32
    scf.if %2 {
      %cst_13 = arith.constant 0.000000e+00 : f32
      %37 = vector.broadcast %cst_13 : f32 to vector<8x128xf32>
      %c0_14 = arith.constant 0 : index
      %c0_15 = arith.constant 0 : index
      %c0_16 = arith.constant 0 : index
      %38 = vector.load %arg4[%c0_14, %c0_15, %c0_16] : memref<1x8x128xf32, #tpu.memory_space<vmem>>, vector<1x8x128xf32>
      %39 = vector.shape_cast %38 : vector<1x8x128xf32> to vector<8x128xf32>
      %40 = vector.shape_cast %37 : vector<8x128xf32> to vector<1x8x128xf32>
      tpu.vector_store %arg4[%c0_14, %c0_15, %c0_16], %40 {strides = array<i32>} : memref<1x8x128xf32, #tpu.memory_space<vmem>>, vector<1x8x128xf32>,
    } else {
    }
    %c0 = arith.constant 0 : index
    %c0_1 = arith.constant 0 : index
    %3 = vector.load %arg2[%c0, %c0_1] : memref<16x128xf32, #tpu.memory_space<vmem>>, vector<16x128xf32>
    %c0_2 = arith.constant 0 : index
    %c0_3 = arith.constant 0 : index
    %4 = vector.load %arg3[%c0_2, %c0_3] : memref<16x128xf32, #tpu.memory_space<vmem>>, vector<16x128xf32>
    %cst = arith.constant 0.000000e+00 : f32
    %5 = vector.broadcast %cst : f32 to vector<16x128xf32>
    %6 = arith.maximumf %3, %5 : vector<16x128xf32>
    %7 = arith.mulf %3, %4 : vector<16x128xf32>
    %8 = arith.subf %6, %7 : vector<16x128xf32>
    %9 = math.absf %3 : vector<16x128xf32>
    %cst_4 = arith.constant 0.000000e+00 : f32
    %10 = vector.broadcast %cst_4 : f32 to vector<16x128xf32>
    %11 = arith.subf %10, %9 : vector<16x128xf32>
    %12 = math.exp %11 : vector<16x128xf32>
    %13 = math.log1p %12 : vector<16x128xf32>
    %14 = arith.addf %8, %13 : vector<16x128xf32>
    %c1_i32 = arith.constant 1 : i32
    %15 = arith.muli %arg0, %c1_i32 : i32
    %16 = arith.addi %15, %arg1 : i32
    %c16_i32 = arith.constant 16 : i32
    %17 = arith.muli %16, %c16_i32 : i32
    %18 = tpu.iota {dimensions = array<i32: 0>} : vector<16x128xi32>
    %19 = vector.broadcast %17 : i32 to vector<16x128xi32>
    %20 = arith.addi %18, %19 : vector<16x128xi32>
    %21 = tpu.iota {dimensions = array<i32: 1>} : vector<16x128xi32>
    %c128_i32 = arith.constant 128 : i32
    %22 = vector.broadcast %c128_i32 : i32 to vector<16x128xi32>
    %23 = arith.muli %20, %22 : vector<16x128xi32>
    %24 = arith.addi %23, %21 : vector<16x128xi32>
    %c2048_i32 = arith.constant 2048 : i32
    %25 = vector.broadcast %c2048_i32 : i32 to vector<16x128xi32>
    %26 = arith.cmpi slt, %24, %25 : vector<16x128xi32>
    %cst_5 = arith.constant 0.000000e+00 : f32
    %27 = vector.broadcast %cst_5 : f32 to vector<16x128xf32>
    %28 = arith.select %26, %14, %27 : vector<16x128xi1>, vector<16x128xf32>
    %c0_6 = arith.constant 0 : index
    %c0_7 = arith.constant 0 : index
    %c0_8 = arith.constant 0 : index
    %29 = vector.load %arg4[%c0_6, %c0_7, %c0_8] : memref<1x8x128xf32, #tpu.memory_space<vmem>>, vector<1x8x128xf32>
    %30 = vector.shape_cast %29 : vector<1x8x128xf32> to vector<8x128xf32>
    %31 = vector.shape_cast %28 : vector<16x128xf32> to vector<2x8x128xf32>
    %cst_9 = arith.constant dense<0.000000e+00> : vector<8x128xf32>
    %32 = vector.multi_reduction <add>, %31, %cst_9 [0] : vector<2x8x128xf32> to vector<8x128xf32>
    %33 = arith.addf %30, %32 : vector<8x128xf32>
    %c0_10 = arith.constant 0 : index
    %c0_11 = arith.constant 0 : index
    %c0_12 = arith.constant 0 : index
    %34 = vector.load %arg4[%c0_10, %c0_11, %c0_12] : memref<1x8x128xf32, #tpu.memory_space<vmem>>, vector<1x8x128xf32>
    %35 = vector.shape_cast %34 : vector<1x8x128xf32> to vector<8x128xf32>
    %36 = vector.shape_cast %33 : vector<8x128xf32> to vector<1x8x128xf32>
    tpu.vector_store %arg4[%c0_10, %c0_11, %c0_12], %36 {strides = array<i32>} : memref<1x8x128xf32, #tpu.memory_space<vmem>>, vector<1x8x128xf32>,
    return
  }
  func.func @transform_0(%arg0: i32, %arg1: i32) -> (i32, i32) {
    %c1_i32 = arith.constant 1 : i32
    %0 = arith.muli %arg0, %c1_i32 : i32
    %1 = arith.addi %0, %arg1 : i32
    %c0_i32 = arith.constant 0 : i32
    %2 = arith.minsi %1, %c0_i32 : i32
    %c0_i32_0 = arith.constant 0 : i32
    %c0_i32_1 = arith.constant 0 : i32
    return %2, %c0_i32_0 : i32, i32
  }
  func.func @transform_1(%arg0: i32, %arg1: i32) -> (i32, i32) {
    %c1_i32 = arith.constant 1 : i32
    %0 = arith.muli %arg0, %c1_i32 : i32
    %1 = arith.addi %0, %arg1 : i32
    %c0_i32 = arith.constant 0 : i32
    %2 = arith.minsi %1, %c0_i32 : i32
    %c0_i32_0 = arith.constant 0 : i32
    %c0_i32_1 = arith.constant 0 : i32
    return %2, %c0_i32_0 : i32, i32
  }
  func.func @transform_2(%arg0: i32, %arg1: i32) -> (i32, i32, i32) {
    %c0_i32 = arith.constant 0 : i32
    %c0_i32_0 = arith.constant 0 : i32
    %c0_i32_1 = arith.constant 0 : i32
    return %arg0, %c0_i32, %c0_i32_0 : i32, i32, i32
  }
}

</mosaic_0001>

<bundles_post_ra>
// kernel: tpu_custom_call.1
= control target key start
LH: loop header
LB: loop body
LE: loop exit
PB: predicated region body
PF: predicated region fallthrough
CT: control target
= control target key end

     0   :  { %7 = vsyncpa [#allocation3], 0  ;;  %s936_s0 = inlined_call_operand.hbm [shape: f32[16,128], index: 0, kind: input, shape index: {}]   ;;  %s937_s1 = inlined_call_operand.hbm [shape: f32[16,128], index: 1, kind: input, shape index: {}]   ;;  %s938_s2 = inlined_call_operand.hbm [shape: f32[2,8,128], index: 2, kind: output, shape index: {}]  }
   0x1   :  { %9 = vsyncpa [#allocation3 + $0x1], 0 }
   0x2   :  { %10 = vsyncpa [#allocation6], 0 }
   0x3   :  { %12 = vsyncpa [#allocation6 + $0x1], 0 }
   0x4   :  { %13 = vsyncpa [#allocation4], 0 }
   0x5   :  { %15 = vsyncpa [#allocation4 + $0x1], 0  ;;  %s732_s9 = smov 0   ;;  %s734_s10 = smov 0  }
   0x6   :  { %s736_s11 = smov 0   ;;  %s738_s12 = smov 0  }
   0x7   :  { %s740_s13 = smov 0   ;;  %s742_s14 = smov 0  }
   0x8   :  { %s744_s15 = smov 0   ;;  %s746_s16 = smov 0  }
   0x9 LB: > { %s420_s17 = sadd.s32 4294967295, %s710_s16   ;;  %s421_s18 = sadd.s32 4294967294, %s710_s16   ;;  %s710_s16 = sphi %s746_s16, %s21_s16   ;;  %s706_s15 = sphi %s744_s15, %s957_s15   ;;  %s702_s14 = sphi %s742_s14, %s956_s14   ;;  %s698_s13 = sphi %s740_s13, %s926_s13   ;;  %s694_s12 = sphi %s738_s12, %s955_s12   ;;  %s690_s11 = sphi %s736_s11, %s954_s11   ;;  %s686_s10 = sphi %s734_s10, %s953_s10   ;;  %s682_s9 = sphi %s732_s9, %s952_s9  }
   0xa   : > { %s33_s19 = sadd.s32 1, %s706_s15  ;;  %p679_p1 = scmp.ne.s32.totalorder %s698_s13, 0 }
   0xb   : > { %p35_p0 = scmp.ge.s32.totalorder %s33_s19, 2  ;;  %p54_p2 = scmp.eq.s32.totalorder %s710_s16, 0 }
   0xc   : > { %p59_p3 = scmp.ne.s32.totalorder %s698_s13, %s694_s12  ;;  %p60_p5 = scmp.eq.s32.totalorder %s420_s17, 0 }
   0xd   : > { %s959_s19 = smov (%p35_p0, %s33_s19), 0  ;;  %p778_p4 = por %p679_p1, %p54_p2 }
   0xe   : > { %p782_p6 = por %p60_p5, %p59_p3  ;;  %s101_s22 = ssub.s32 %s706_s15, %s959_s19 }
   0xf   : > { %p102_p7 = scmp.eq.s32.totalorder %s101_s22, 0  ;;  %s104_s23 = sadd.s32 1, %s690_s11 }
  0x10   : > { %s942_s21 = scalar_select %p782_p6, 1, 0 }
  0x11   : > { %s790_s24 = scalar_select %p102_p7, %s690_s11, %s104_s23  }
  0x12   : > { %p114_p8 = scmp.ne.s32.totalorder %s690_s11, %s686_s10  ;;  %p115_p9 = scmp.eq.s32.totalorder %s420_s17, 1 }
  0x13   : > { %p120_p10 = scmp.ne.s32.totalorder %s686_s10, %s682_s9  ;;  %p121_p11 = scmp.eq.s32.totalorder %s421_s18, 1 }
  0x14   : > { %p796_p12 = por %p115_p9, %p114_p8  ;;  %p458_p1 = scmp.lt.s32.totalorder %s710_s16, 2 }
  0x15   : > { %p801_p0 = por %p121_p11, %p120_p10  ;;  %s712_s27 = smov [#allocation2]  }
  0x16   : > { %s943_s25 = scalar_select %p796_p12, 1, 0 }
  0x17   : > { %s944_s26 = scalar_select %p801_p0, 1, 0 }
  0x18   : > { %s155_s28 = sshll.u32 %s712_s27, 4  ;;  %p808_p2 = pnand %p458_p1, %p778_p4  ;;  %s156_s28 = int_to_ptr.vmem [resolvable:$true] %s155_s28 }
  0x19   : > { %s543_s4 = scalar_lea.hbm %s936_s0, 256 }
  0x1a   : > { %p544_p3 = scmp.ne.s32.totalorder %s936_s0, %s543_s4  ;;  %p545_p5 = pneg %p808_p2 }
  0x1b   : > { %p550_p8 = scmp.lt.u32.totalorder %s543_s4, %s543_s4  ;;  %p552_p9 = scmp.lt.u32.totalorder %s543_s4, %s936_s0 }
  0x1c   : > { %p546_p7 = pnand %p545_p5, %p544_p3 }
  0x1d   : > { %p553_p10 = por %p552_p9, %p550_p8 }
  0x1e   : > { %p547_p4 = pneg %p546_p7 }
  0x20   : > { %p554_p11 = pnand %p553_p10, %p547_p4 }
  0x22   : > { %557 = shalt.err (!%p554_p11)
}
  0x23   : > { %s558_s12 = scalar_lea.vmem %s156_s28, 256  ;;  %s565_s17 = scalar_lea.vmem %s156_s28, 512 }
  0x24   : > { %p559_p1 = scmp.ne.s32.totalorder %s156_s28, %s558_s12  ;;  %p566_p12 = scmp.lt.s32.totalorder %s156_s28, %s156_s28 }
  0x25   : > { %p567_p6 = scmp.lt.s32.totalorder %s565_s17, %s558_s12 }
  0x26   : > { %p561_p13 = pnand %p559_p1, %p545_p5 }
  0x27   : > { %p568_p3 = por %p567_p6, %p566_p12 }
  0x28   : > { %p562_p0 = pneg %p561_p13 }
  0x2a   : > { %p569_p7 = pnand %p568_p3, %p562_p0 }
  0x2c   : > { %572 = shalt.err (!%p569_p7)
}
  0x2d   : > { %s713_s18 = smov 128   ;;  %s714_s20 = smov 8  }
  0x2e   : > { %450 = dma.hbm_to_vmem [thread:$0]  (!%p808_p2), %s936_s0, 256, %s156_s28, [#allocation3], %s713_s18, %s713_s18, %s714_s20  }
  0x2f   : > { %p430_p13 = scmp.ge.s32.totalorder %s710_s16, 1  ;;  %p187_p4 = scmp.lt.s32.totalorder %s710_s16, 3 }
  0x30   : > { %s715_s30 = smov [#allocation5]   ;;  %s573_s6 = scalar_lea.hbm %s937_s1, 256 }
  0x31   : > { %p839_p8 = pnand %p430_p13, %p187_p4  ;;  %s179_s3 = sshll.u32 %s715_s30, 4  ;;  %s180_s3 = int_to_ptr.vmem [resolvable:$true] %s179_s3 }
  0x32   : > { %p574_p6 = scmp.ne.s32.totalorder %s937_s1, %s573_s6  ;;  %p580_p9 = scmp.lt.u32.totalorder %s573_s6, %s573_s6 }
  0x33   : > { %s946_s27 = scalar_select %p839_p8, 1, 0 }
  0x34   : > { %p576_p12 = pnand %p574_p6, %p545_p5  ;;  %p582_p10 = scmp.lt.u32.totalorder %s573_s6, %s937_s1 }
  0x36   : > { %p577_p0 = pneg %p576_p12  ;;  %p583_p11 = por %p582_p10, %p580_p9 }
  0x38   : > { %p584_p1 = pnand %p583_p11, %p577_p0 }
  0x3a   : > { %587 = shalt.err (!%p584_p1)
}
  0x3b   : > { %s588_s17 = scalar_lea.vmem %s180_s3, 256  ;;  %s595_s22 = scalar_lea.vmem %s180_s3, 512 }
  0x3c   : > { %p589_p3 = scmp.ne.s32.totalorder %s180_s3, %s588_s17  ;;  %p596_p4 = scmp.lt.s32.totalorder %s180_s3, %s180_s3 }
  0x3d   : > { %p597_p8 = scmp.lt.s32.totalorder %s595_s22, %s588_s17 }
  0x3e   : > { %p591_p7 = pnand %p589_p3, %p545_p5 }
  0x3f   : > { %p598_p6 = por %p597_p8, %p596_p4 }
  0x40   : > { %p592_p13 = pneg %p591_p7 }
  0x42   : > { %p599_p12 = pnand %p598_p6, %p592_p13 }
  0x44   : > { %602 = shalt.err (!%p599_p12)
}
  0x45   : > { %453 = dma.hbm_to_vmem [thread:$0]  (!%p808_p2), %s937_s1, 256, %s180_s3, [#allocation6], %s713_s18, %s713_s18, %s714_s20  }
  0x46   : > { %p947_p0 = scmp.ne.s32.totalorder %s946_s27, 0 }
  0x47   : > { %s193_s4 = sand.u32 (!%p947_p0), 1, %s698_s13   ;;  %p948_p5 = scmp.ne.s32.totalorder (!%p947_p0), %s942_s21, 0 }
  0x48   : > { %191 = sbr.rel (%p947_p0) target bundleno = 136 (0x88), region = 28  ;;  %s431_s5 = sshll.u32 (!%p947_p0), %s193_s4, 4 }
  0x49   : > { %s194_s6 = scalar_lea.sflag (!%p947_p0), [#allocation3], %s193_s4  ;;  %s197_s7 = scalar_lea.vmem (!%p947_p0), [#allocation2], %s431_s5 }
  0x4f   : > { %668 = dma.done.wait (%p948_p5), %s194_s6, 256  }
  0x50   : > { %670 = vsyncadd (%p948_p5), %s194_s6, 4294967040  ;;  %s203_s29 = scalar_lea.sflag [#allocation6], %s193_s4  ;;  %s206_s8 = scalar_lea.vmem [#allocation5], %s431_s5 }
  0x51   : > { %672 = dma.done.wait (%p948_p5), %s203_s29, 256  }
  0x52   : > { %674 = vsyncadd (%p948_p5), %s203_s29, 4294967040  ;;  %v245_v0 = vld [vmem:[%s197_s7] sm:$0xff]  ;;  %v246_v1 = vld [vmem:[%s197_s7 + $0x8] sm:$0xff]  ;;  %v285_v8 = vlaneseq  ;;  %s434_s18 = sshll.u32 %s702_s14, 4  ;;  %s229_s21 = sand.u32 1, %s686_s10  }
  0x53   : > { %v255_v2 = vand.u32 2147483647, %v245_v0  ;;  %v256_v3 = vand.u32 2147483647, %v246_v1  ;;  %v288_v14 = vstv %s434_s18  ;;  %v247_v20 = vld [vmem:[%s206_s8] sm:$0xff]  ;;  %v248_v21 = vld [vmem:[%s206_s8 + $0x8] sm:$0xff] }
  0x54   : > { %v286_v9 = vshrl.u32 %v285_v8, 7  ;;  %v249_v22 = vmax.f32 %v245_v0, 0.0  ;;  %v292_v24 = vand.u32 127, %v285_v8  ;;  %v251_v26 = vmul.f32 %v247_v20, %v245_v0  ;;  %s433_s20 = sshll.u32 %s229_s21, 3  ;;  %s436_s27 = sshll.u32 %s702_s14, 7 }
  0x55   : > { %v257_v4 = vsub.f32 0.0, %v255_v2  ;;  %v258_v5 = vsub.f32 0.0, %v256_v3  ;;  %v250_v30 = vmax.f32 %v246_v1, 0.0  ;;  %v252_v31 = vmul.f32 %v248_v21, %v246_v1  ;;  %s231_s3 = scalar_lea.vmem [#allocation7], %s433_s20  ;;  %s883_s22 = scalar_lea.hbm %s938_s2, %s436_s27 }
  0x56   : > { %v287_v13 = vadd.s32 8, %v286_v9  ;;  %v289_v17 = vadd.s32 %v288_v14, %v286_v9  ;;  %v253_v36 = vsub.f32 %v249_v22, %v251_v26  ;;  %s319_s28 = sshll.u32 %s231_s3, 4  ;;  %s306_s23 = scalar_lea.sflag [#allocation4], %s229_s21  ;;  %s885_s28 = int_to_ptr.vmem [resolvable:$true] %s319_s28 }
  0x57   : > { %v259_v6 = vmul.f32 1.442695, %v257_v4  ;;  %v261_v7 = vmul.f32 1.442695, %v258_v5  ;;  %v254_v40 = vsub.f32 %v250_v30, %v252_v31  ;;  %s603_s30 = scalar_lea.vmem %s885_s28, 128  ;;  %p949_p8 = scmp.ne.s32.totalorder %s943_s25, 0 }
  0x58   : > { %v290_v19 = vadd.s32 %v288_v14, %v287_v13  ;;  %v293_v25 = vmul.u32 128, %v289_v17  ;;  %p604_p2 = scmp.ne.s32.totalorder %s885_s28, %s603_s30  ;;  %s716_s14 = smov [#allocation7]  }
  0x59   : > { %535 = vpow2.f32 %v259_v6  ;;  %s607_s4 = sshll.u32 %s716_s14, 4  ;;  %s608_s4 = int_to_ptr.vmem [resolvable:$false] %s607_s4 }
  0x5a   : > { %537 = vpow2.f32 %v261_v7  ;;  %v294_v29 = vmul.u32 128, %v290_v19  ;;  %v295_v34 = vadd.s32 %v293_v25, %v292_v24  ;;  %p605_p9 = pnand %p604_p2, %p949_p8  ;;  %s609_s5 = scalar_lea.vmem %s608_s4, 256 }
  0x5b   : > { %p610_p11 = scmp.lt.s32.totalorder %s885_s28, %s608_s4  ;;  %p611_p1 = scmp.lt.s32.totalorder %s609_s5, %s603_s30 }
  0x5c   : > { %v296_v38 = vadd.s32 %v294_v29, %v292_v24  ;;  %vm297_vm2 = vcmp.lt.s32.totalorder %v295_v34, 2048  ;;  %p606_p10 = pneg %p605_p9 }
  0x5d   : > { %p612_p3 = por %p611_p1, %p610_p11 }
  0x5e   : > { %vm298_vm3 = vcmp.lt.s32.totalorder %v296_v38, 2048 }
  0x5f   : > { %p613_p7 = pnand %p612_p3, %p606_p10 }
  0x63   : > { %v536_v10 = vpop.eup %535 }
  0x64   : > { %v538_v11 = vpop.eup %537  ;;  %v263_v12 = vadd.f32 1.0, %v536_v10  ;;  %v266_v16 = vmul.f32 -0.5, %v536_v10  ;;  %v269_v27 = vand.u32 2147483647, %v536_v10 }
  0x65   : > { %v272_v15 = vadd.f32 1.0, %v538_v11  ;;  %v275_v18 = vmul.f32 -0.5, %v538_v11  ;;  %v278_v32 = vand.u32 2147483647, %v538_v11 }
  0x66   : > { %539 = vlog2.f32 %v263_v12  ;;  %v267_v23 = vadd.f32 1.0, %v266_v16  ;;  %vm270_vm0 = vcmp.lt.f32.partialorder %v269_v27, 0.0004427343 }
  0x67   : > { %541 = vlog2.f32 %v272_v15  ;;  %v276_v28 = vadd.f32 1.0, %v275_v18  ;;  %vm279_vm1 = vcmp.lt.f32.partialorder %v278_v32, 0.0004427343 }
  0x68   : > { %v268_v33 = vmul.f32 %v536_v10, %v267_v23 }
  0x69   : > { %v277_v37 = vmul.f32 %v538_v11, %v276_v28 }
  0x70   : > { %v540_v35 = vpop.eup %539 }
  0x71   : > { %v542_v39 = vpop.eup %541  ;;  %v265_v41 = vmul.f32 0.6931472, %v540_v35 }
  0x72   : > { %v274_v42 = vmul.f32 0.6931472, %v542_v39 }
  0x73   : > { %v271_v43 = vsel %vm270_vm0, %v268_v33, %v265_v41 }
  0x74   : > { %v280_v44 = vsel %vm279_vm1, %v277_v37, %v274_v42  ;;  %v281_v45 = vadd.f32 %v271_v43, %v253_v36 }
  0x75   : > { %v282_v46 = vadd.f32 %v280_v44, %v254_v40 }
  0x76   : > { %v299_v47 = vsel %vm297_vm2, %v281_v45, 0.0 }
  0x77   : > { %v300_v48 = vsel %vm298_vm3, %v282_v46, 0.0 }
  0x78   : > { %v302_v49 = vadd.f32 %v300_v48, %v299_v47 }
  0x7a   : > { %304 = vst [vmem:[%s231_s3] sm:$0xff] %v302_v49 }
  0x7b   : > { %616 = shalt.err (!%p613_p7)
}
  0x7c   : > { %s617_s6 = scalar_lea.hbm %s883_s22, 128  ;;  %s621_s8 = scalar_lea.hbm %s938_s2, 256 }
  0x7d   : > { %p618_p13 = scmp.ne.s32.totalorder %s883_s22, %s617_s6  ;;  %p622_p12 = scmp.lt.u32.totalorder %s883_s22, %s938_s2 }
  0x7e   : > { %p623_p0 = scmp.lt.u32.totalorder %s621_s8, %s617_s6  ;;  %p625_p2 = scmp.lt.u32.totalorder %s617_s6, %s883_s22 }
  0x7f   : > { %p619_p4 = pnand %p618_p13, %p949_p8 }
  0x80   : > { %p624_p5 = por %p623_p0, %p622_p12 }
  0x81   : > { %p620_p6 = pneg %p619_p4 }
  0x82   : > { %p626_p9 = por %p625_p2, %p624_p5 }
  0x84   : > { %p627_p10 = pnand %p626_p9, %p620_p6 }
  0x86   : > { %630 = shalt.err (!%p627_p10)
}
  0x87   : > { %445 = dma.vmem_to_hbm [thread:$0]  (%p949_p8), %s885_s28, 128, %s883_s22, %s306_s23  }
  0x88 PF: > { %s331_s20 = sand.u32 1, %s682_s9   ;;  %p950_p11 = scmp.ne.s32.totalorder %s944_s26, 0 }
  0x89   : > { %p951_p1 = scmp.ge.s32.totalorder %s710_s16, 2  ;;  %s332_s27 = scalar_lea.sflag [#allocation4], %s331_s20 }
  0x8b   : > { %p455_p3 = pnand %p951_p1, %p950_p11 }
  0x8d   : > { %676 = dma.done.wait (!%p455_p3), %s332_s27, 128  }
  0x8e   : > { %678 = vsyncadd (!%p455_p3), %s332_s27, 4294967168  ;;  %s21_s16 = sadd.s32 1, %s710_s16   ;;  %s952_s9 = smov %s686_s10 }
  0x8f   : > { %p18_p7 = scmp.ge.s32.totalorder %s21_s16, 4   ;;  %s953_s10 = smov %s690_s11 }
  0x90   : > { %s954_s11 = smov %s790_s24  ;;  %s955_s12 = smov %s698_s13 }
  0x91   : > { %s926_s13 = smov 0   ;;  %s956_s14 = smov %s706_s15 }
  0x92   : > { %s957_s15 = smov %s959_s19  ;;  %20 = sbr.rel (!%p18_p7) target bundleno = 9 (0x9), region = 90 }
  0x99   :  { %337 = vsyncpa [#allocation3], 1 }
  0x9a   :  { %339 = vsyncpa [#allocation3 + $0x1], 1 }
  0x9b   :  { %340 = vsyncpa [#allocation6], 1 }
  0x9c   :  { %342 = vsyncpa [#allocation6 + $0x1], 1 }
  0x9d   :  { %343 = vsyncpa [#allocation4], 1 }
  0x9e   :  { %345 = vsyncpa [#allocation4 + $0x1], 1 }

</bundles_post_ra>
